<compile_context>
chip_gen: v7x
topology: tpu7x:2x2x1
jax: 0.10.0
libtpu: 0.0.40
codegen_flags: <defaults>
</compile_context>

<pallas_src>
import functools

import numpy as np

import jax
import jax.numpy as jnp
from jax import lax
from jax.experimental import pallas as pl
from jax.experimental.pallas import tpu as pltpu


def lstm_wavefront_kernel(x_ref, w_ref, b_ref, wfc_ref, bfc_ref, o_ref, *,
                          num_layers, hidden_dim, batch, seq_len):
    """Stacked LSTM (wavefront schedule) + final Linear, all VMEM-resident.

    x_ref   : (T, B, H)          time-major input, features zero-padded to H
    w_ref   : ((L+1)H, 4LH)      fused block-bidiagonal weights, gate-major cols
    b_ref   : (1, 4LH)           fused bias (b_ih + b_hh), gate-major cols
    wfc_ref : (1, LH)            fc weights placed in top-layer lanes, else 0
    bfc_ref : (1, 1)  [SMEM]     fc bias scalar
    o_ref   : (B, 1)             output
    """
    T, B, H, L = seq_len, batch, hidden_dim, num_layers
    LH = L * H

    # Static lane masks (hoisted; JAX does not CSE broadcast_in_dim).
    lane4 = lax.broadcasted_iota(jnp.int32, (B, 4 * LH), 1)
    g_mask = (lane4 >= 2 * LH) & (lane4 < 3 * LH)          # 'g' gate slab
    lane1 = lax.broadcasted_iota(jnp.int32, (B, LH), 1)    # for edge-step masks

    # Per-layer h/c state packed as lane slabs: lanes [l*H:(l+1)*H] = layer l.
    h_slab = jnp.zeros((B, LH), jnp.float32)
    c_slab = jnp.zeros((B, LH), jnp.float32)

    # Wavefront: at step s, layer l processes timestep t = s - l.  The stored
    # h_slab holds, for every layer l, h_l at time (s-1)-l — which is exactly
    # both layer l's previous hidden AND layer l+1's input for this step.
    for s in range(T + L - 1):
        x_t = x_ref[s] if s < T else jnp.zeros((B, H), jnp.float32)
        lhs = jnp.concatenate([x_t, h_slab], axis=-1)        # (B, (L+1)H)

        gates = jnp.dot(lhs, w_ref[...],
                        preferred_element_type=jnp.float32) + b_ref[...]

        # One full-width EUP pass: tanh for 'g', sigmoid via tanh(x/2) for i/f/o.
        pre = jnp.where(g_mask, gates, 0.5 * gates)
        th = jnp.tanh(pre)
        act = jnp.where(g_mask, th, 0.5 * th + 0.5)

        i_s = act[:, 0:LH]
        f_s = act[:, LH:2 * LH]
        g_s = act[:, 2 * LH:3 * LH]
        o_s = act[:, 3 * LH:4 * LH]

        c_new = f_s * c_slab + i_s * g_s                    # all layers at once
        h_new = o_s * jnp.tanh(c_new)                       # one cell tanh/step

        # Active layers this step form the contiguous range [lo, hi].
        lo = max(0, s - T + 1)
        hi = min(s, L - 1)
        if lo == 0 and hi == L - 1:                         # steady state
            h_slab, c_slab = h_new, c_new
        else:                                               # wavefront edges
            m = (lane1 >= lo * H) & (lane1 < (hi + 1) * H)
            h_slab = jnp.where(m, h_new, h_slab)
            c_slab = jnp.where(m, c_new, c_slab)

    # fc(out[:, -1, :]): wfc is nonzero only in the top layer's lanes, so the
    # VPU multiply + lane reduction extracts h_{L-1}[T-1] and applies fc in one.
    y = jnp.sum(h_slab * wfc_ref[...], axis=-1, keepdims=True) + bfc_ref[0, 0]
    o_ref[...] = y


def init_lstm_params(key, input_dim, hidden_dim, num_layers, output_dim):
    """Deterministic init mirroring nn.LSTM / nn.Linear parameter shapes."""
    H = hidden_dim
    k = 1.0 / jnp.sqrt(jnp.float32(H))
    params = {"w_ih": [], "w_hh": [], "b_ih": [], "b_hh": []}
    for layer in range(num_layers):
        in_dim = input_dim if layer == 0 else H
        key, k1, k2, k3, k4 = jax.random.split(key, 5)
        params["w_ih"].append(jax.random.uniform(k1, (4 * H, in_dim), jnp.float32, -k, k))
        params["w_hh"].append(jax.random.uniform(k2, (4 * H, H), jnp.float32, -k, k))
        params["b_ih"].append(jax.random.uniform(k3, (4 * H,), jnp.float32, -k, k))
        params["b_hh"].append(jax.random.uniform(k4, (4 * H,), jnp.float32, -k, k))
    key, k5, k6 = jax.random.split(key, 3)
    kf = 1.0 / jnp.sqrt(jnp.float32(H))
    params["fc_w"] = jax.random.uniform(k5, (output_dim, H), jnp.float32, -kf, kf)
    params["fc_b"] = jax.random.uniform(k6, (output_dim,), jnp.float32, -kf, kf)
    return params


def prepare_lstm_weights(params, *, input_dim, hidden_dim, num_layers):
    """One-time (hoisted) weight preprocessing for the wavefront kernel.

    Builds the fused block-bidiagonal weight matrix W ((L+1)H, 4LH) with
    gate-major / layer-minor columns:
      rows [l*H:(l+1)*H]      -> wih_l^T  (layer l's input: x for l=0, h_{l-1} else)
      rows [(l+1)*H:(l+2)*H]  -> whh_l^T  (layer l's previous hidden)
      cols [q*LH + l*H : ...] -> gate q (torch order i,f,g,o) of layer l
    plus the fused bias, the fc-weight lane slab and the fc bias scalar.
    """
    H, L, D = hidden_dim, num_layers, input_dim
    assert D <= H, "kernel layout assumes input_dim <= hidden_dim"
    LH = L * H
    w = np.zeros(((L + 1) * H, 4 * LH), np.float32)
    b = np.zeros((1, 4 * LH), np.float32)
    for l in range(L):
        w_ih = np.asarray(params["w_ih"][l], np.float32)          # (4H, in_dim)
        w_hh = np.asarray(params["w_hh"][l], np.float32)          # (4H, H)
        bias = np.asarray(params["b_ih"][l], np.float32) + np.asarray(
            params["b_hh"][l], np.float32)                        # (4H,)
        in_dim = w_ih.shape[1]
        for q in range(4):                                        # i, f, g, o
            cols = slice(q * LH + l * H, q * LH + (l + 1) * H)
            w[l * H: l * H + in_dim, cols] = w_ih[q * H:(q + 1) * H, :].T
            w[(l + 1) * H:(l + 2) * H, cols] = w_hh[q * H:(q + 1) * H, :].T
            b[0, cols] = bias[q * H:(q + 1) * H]
    wfc = np.zeros((1, LH), np.float32)
    wfc[0, (L - 1) * H:] = np.asarray(params["fc_w"], np.float32).reshape(-1)[:H]
    bfc = np.asarray(params["fc_b"], np.float32).reshape(1, 1)
    return {"w": jnp.asarray(w), "b": jnp.asarray(b),
            "wfc": jnp.asarray(wfc), "bfc": jnp.asarray(bfc)}


def lstm_model_forward(x, prep, *, hidden_dim, num_layers):
    """Pallas-backed forward of LSTMModel. x: (B, T, input_dim) float32."""
    B, T, D = x.shape
    H, L = hidden_dim, num_layers
    assert D <= H, "kernel layout assumes input_dim <= hidden_dim"

    # Per-call data prep only: time-major + feature zero-pad -> (T, B, H).
    x_tbh = jnp.pad(jnp.transpose(x, (1, 0, 2)), ((0, 0), (0, 0), (0, H - D)))

    kernel = functools.partial(lstm_wavefront_kernel, num_layers=L,
                               hidden_dim=H, batch=B, seq_len=T)
    out = pl.pallas_call(
        kernel,
        out_shape=jax.ShapeDtypeStruct((B, 1), jnp.float32),
        in_specs=[
            pl.BlockSpec(memory_space=pltpu.MemorySpace.VMEM),   # x (T,B,H)
            pl.BlockSpec(memory_space=pltpu.MemorySpace.VMEM),   # fused W
            pl.BlockSpec(memory_space=pltpu.MemorySpace.VMEM),   # fused bias
            pl.BlockSpec(memory_space=pltpu.MemorySpace.VMEM),   # fc weight slab
            pl.BlockSpec(memory_space=pltpu.MemorySpace.SMEM),   # fc bias scalar
        ],
        out_specs=pl.BlockSpec(memory_space=pltpu.MemorySpace.VMEM),
    )(x_tbh, prep["w"], prep["b"], prep["wfc"], prep["bfc"])
    return out


def lstm_model_forward_ref(x, params, *, hidden_dim, num_layers):
    """Pure-JAX reference (same math as torch nn.LSTM + Linear)."""
    B, T, D = x.shape
    H = hidden_dim
    seq = x
    for l in range(num_layers):
        w_ih, w_hh = params["w_ih"][l], params["w_hh"][l]
        b = params["b_ih"][l] + params["b_hh"][l]
        h = jnp.zeros((B, H), jnp.float32)
        c = jnp.zeros((B, H), jnp.float32)
        outs = []
        for t in range(T):
            gates = seq[:, t, :] @ w_ih.T + h @ w_hh.T + b
            i = jax.nn.sigmoid(gates[:, 0:H])
            f = jax.nn.sigmoid(gates[:, H:2 * H])
            g = jnp.tanh(gates[:, 2 * H:3 * H])
            o = jax.nn.sigmoid(gates[:, 3 * H:4 * H])
            c = f * c + i * g
            h = o * jnp.tanh(c)
            outs.append(h)
        seq = jnp.stack(outs, axis=1)
    return seq[:, -1, :] @ params["fc_w"].T + params["fc_b"]


if __name__ == "__main__":
    # Shapes implied by the module: input_dim = len(features) = 6,
    # hidden_dim = 32, num_layers = 2, output_dim = 1; small batch/seq.
    input_dim, hidden_dim, num_layers, output_dim = 6, 32, 2, 1
    batch, seq_len = 2, 8

    key = jax.random.PRNGKey(0)
    key, xk = jax.random.split(key)
    x = jax.random.normal(xk, (batch, seq_len, input_dim), jnp.float32)
    params = init_lstm_params(key, input_dim, hidden_dim, num_layers, output_dim)

    # One-time hoisted weight preprocessing (kept out of the forward path).
    prep = prepare_lstm_weights(params, input_dim=input_dim,
                                hidden_dim=hidden_dim, num_layers=num_layers)

    out = lstm_model_forward(x, prep, hidden_dim=hidden_dim,
                             num_layers=num_layers)
    out = jax.block_until_ready(out)

    ref = lstm_model_forward_ref(x, params, hidden_dim=hidden_dim,
                                 num_layers=num_layers)
    assert out.shape == (batch, output_dim)
    assert jnp.allclose(out, ref, rtol=1e-5, atol=1e-5), (out, ref)
    print("KERNEL_OK")
</pallas_src>

<mosaic_0001>
module attributes {stable_mosaic.version = 11 : i64} {
  func.func @lstm_wavefront_kernel(%arg0: memref<8x2x32xf32, #tpu.memory_space<vmem>>, %arg1: memref<96x256xf32, #tpu.memory_space<vmem>>, %arg2: memref<1x256xf32, #tpu.memory_space<vmem>>, %arg3: memref<1x64xf32, #tpu.memory_space<vmem>>, %arg4: memref<1x1xf32, #tpu.memory_space<smem>>, %arg5: memref<2x1xf32, #tpu.memory_space<vmem>>) attributes {dimension_semantics = [], scalar_prefetch = 0 : i64, scratch_operands = 0 : i64, tpu.core_type = #tpu.core_type<tc>} {
    %0 = tpu.iota {dimensions = array<i32: 1>} : vector<2x256xi32>
    %c128_i32 = arith.constant 128 : i32
    %1 = vector.broadcast %c128_i32 : i32 to vector<2x256xi32>
    %2 = arith.cmpi sge, %0, %1 : vector<2x256xi32>
    %c192_i32 = arith.constant 192 : i32
    %3 = vector.broadcast %c192_i32 : i32 to vector<2x256xi32>
    %4 = arith.cmpi slt, %0, %3 : vector<2x256xi32>
    %5 = arith.andi %2, %4 : vector<2x256xi1>
    %6 = tpu.iota {dimensions = array<i32: 1>} : vector<2x64xi32>
    %cst = arith.constant 0.000000e+00 : f32
    %7 = vector.broadcast %cst : f32 to vector<2x64xf32>
    %cst_0 = arith.constant 0.000000e+00 : f32
    %8 = vector.broadcast %cst_0 : f32 to vector<2x64xf32>
    %c0 = arith.constant 0 : index
    %c0_1 = arith.constant 0 : index
    %c0_2 = arith.constant 0 : index
    %9 = vector.load %arg0[%c0, %c0_1, %c0_2] : memref<8x2x32xf32, #tpu.memory_space<vmem>>, vector<1x2x32xf32>
    %10 = vector.shape_cast %9 : vector<1x2x32xf32> to vector<2x32xf32>
    %11 = tpu.concatenate %10, %7 in 1 : vector<2x32xf32>, vector<2x64xf32> -> vector<2x96xf32>
    %c0_3 = arith.constant 0 : index
    %c0_4 = arith.constant 0 : index
    %12 = vector.load %arg1[%c0_3, %c0_4] : memref<96x256xf32, #tpu.memory_space<vmem>>, vector<96x256xf32>
    %cst_5 = arith.constant dense<0.000000e+00> : vector<2x256xf32>
    %13 = tpu.matmul %11, %12, %cst_5 {dimension_numbers = #tpu.dot_dimension_numbers<[1], [0], [0], [1], [0, 0, 1, 1], [], []>} : vector<2x96xf32>, vector<96x256xf32>, vector<2x256xf32> -> vector<2x256xf32>
    %c0_6 = arith.constant 0 : index
    %c0_7 = arith.constant 0 : index
    %14 = vector.load %arg2[%c0_6, %c0_7] : memref<1x256xf32, #tpu.memory_space<vmem>>, vector<1x256xf32>
    %15 = vector.broadcast %14 : vector<1x256xf32> to vector<2x256xf32>
    %16 = arith.addf %13, %15 : vector<2x256xf32>
    %cst_8 = arith.constant 5.000000e-01 : f32
    %17 = vector.broadcast %cst_8 : f32 to vector<2x256xf32>
    %18 = arith.mulf %17, %16 : vector<2x256xf32>
    %19 = arith.select %5, %16, %18 : vector<2x256xi1>, vector<2x256xf32>
    %20 = math.tanh %19 : vector<2x256xf32>
    %cst_9 = arith.constant 5.000000e-01 : f32
    %21 = vector.broadcast %cst_9 : f32 to vector<2x256xf32>
    %22 = arith.mulf %21, %20 : vector<2x256xf32>
    %cst_10 = arith.constant 5.000000e-01 : f32
    %23 = vector.broadcast %cst_10 : f32 to vector<2x256xf32>
    %24 = arith.addf %22, %23 : vector<2x256xf32>
    %25 = arith.select %5, %20, %24 : vector<2x256xi1>, vector<2x256xf32>
    %26 = vector.extract_strided_slice %25 {offsets = [0, 0], sizes = [2, 64], strides = [1, 1]} : vector<2x256xf32> to vector<2x64xf32>
    %27 = vector.extract_strided_slice %25 {offsets = [0, 64], sizes = [2, 64], strides = [1, 1]} : vector<2x256xf32> to vector<2x64xf32>
    %28 = vector.extract_strided_slice %25 {offsets = [0, 128], sizes = [2, 64], strides = [1, 1]} : vector<2x256xf32> to vector<2x64xf32>
    %29 = vector.extract_strided_slice %25 {offsets = [0, 192], sizes = [2, 64], strides = [1, 1]} : vector<2x256xf32> to vector<2x64xf32>
    %30 = arith.mulf %27, %8 : vector<2x64xf32>
    %31 = arith.mulf %26, %28 : vector<2x64xf32>
    %32 = arith.addf %30, %31 : vector<2x64xf32>
    %33 = math.tanh %32 : vector<2x64xf32>
    %34 = arith.mulf %29, %33 : vector<2x64xf32>
    %c0_i32 = arith.constant 0 : i32
    %35 = vector.broadcast %c0_i32 : i32 to vector<2x64xi32>
    %36 = arith.cmpi sge, %6, %35 : vector<2x64xi32>
    %c32_i32 = arith.constant 32 : i32
    %37 = vector.broadcast %c32_i32 : i32 to vector<2x64xi32>
    %38 = arith.cmpi slt, %6, %37 : vector<2x64xi32>
    %39 = arith.andi %36, %38 : vector<2x64xi1>
    %40 = arith.select %39, %34, %7 : vector<2x64xi1>, vector<2x64xf32>
    %41 = arith.select %39, %32, %8 : vector<2x64xi1>, vector<2x64xf32>
    %c1 = arith.constant 1 : index
    %c0_11 = arith.constant 0 : index
    %c0_12 = arith.constant 0 : index
    %42 = vector.load %arg0[%c1, %c0_11, %c0_12] : memref<8x2x32xf32, #tpu.memory_space<vmem>>, vector<1x2x32xf32>
    %43 = vector.shape_cast %42 : vector<1x2x32xf32> to vector<2x32xf32>
    %44 = tpu.concatenate %43, %40 in 1 : vector<2x32xf32>, vector<2x64xf32> -> vector<2x96xf32>
    %c0_13 = arith.constant 0 : index
    %c0_14 = arith.constant 0 : index
    %45 = vector.load %arg1[%c0_13, %c0_14] : memref<96x256xf32, #tpu.memory_space<vmem>>, vector<96x256xf32>
    %cst_15 = arith.constant dense<0.000000e+00> : vector<2x256xf32>
    %46 = tpu.matmul %44, %45, %cst_15 {dimension_numbers = #tpu.dot_dimension_numbers<[1], [0], [0], [1], [0, 0, 1, 1], [], []>} : vector<2x96xf32>, vector<96x256xf32>, vector<2x256xf32> -> vector<2x256xf32>
    %c0_16 = arith.constant 0 : index
    %c0_17 = arith.constant 0 : index
    %47 = vector.load %arg2[%c0_16, %c0_17] : memref<1x256xf32, #tpu.memory_space<vmem>>, vector<1x256xf32>
    %48 = vector.broadcast %47 : vector<1x256xf32> to vector<2x256xf32>
    %49 = arith.addf %46, %48 : vector<2x256xf32>
    %cst_18 = arith.constant 5.000000e-01 : f32
    %50 = vector.broadcast %cst_18 : f32 to vector<2x256xf32>
    %51 = arith.mulf %50, %49 : vector<2x256xf32>
    %52 = arith.select %5, %49, %51 : vector<2x256xi1>, vector<2x256xf32>
    %53 = math.tanh %52 : vector<2x256xf32>
    %cst_19 = arith.constant 5.000000e-01 : f32
    %54 = vector.broadcast %cst_19 : f32 to vector<2x256xf32>
    %55 = arith.mulf %54, %53 : vector<2x256xf32>
    %cst_20 = arith.constant 5.000000e-01 : f32
    %56 = vector.broadcast %cst_20 : f32 to vector<2x256xf32>
    %57 = arith.addf %55, %56 : vector<2x256xf32>
    %58 = arith.select %5, %53, %57 : vector<2x256xi1>, vector<2x256xf32>
    %59 = vector.extract_strided_slice %58 {offsets = [0, 0], sizes = [2, 64], strides = [1, 1]} : vector<2x256xf32> to vector<2x64xf32>
    %60 = vector.extract_strided_slice %58 {offsets = [0, 64], sizes = [2, 64], strides = [1, 1]} : vector<2x256xf32> to vector<2x64xf32>
    %61 = vector.extract_strided_slice %58 {offsets = [0, 128], sizes = [2, 64], strides = [1, 1]} : vector<2x256xf32> to vector<2x64xf32>
    %62 = vector.extract_strided_slice %58 {offsets = [0, 192], sizes = [2, 64], strides = [1, 1]} : vector<2x256xf32> to vector<2x64xf32>
    %63 = arith.mulf %60, %41 : vector<2x64xf32>
    %64 = arith.mulf %59, %61 : vector<2x64xf32>
    %65 = arith.addf %63, %64 : vector<2x64xf32>
    %66 = math.tanh %65 : vector<2x64xf32>
    %67 = arith.mulf %62, %66 : vector<2x64xf32>
    %c2 = arith.constant 2 : index
    %c0_21 = arith.constant 0 : index
    %c0_22 = arith.constant 0 : index
    %68 = vector.load %arg0[%c2, %c0_21, %c0_22] : memref<8x2x32xf32, #tpu.memory_space<vmem>>, vector<1x2x32xf32>
    %69 = vector.shape_cast %68 : vector<1x2x32xf32> to vector<2x32xf32>
    %70 = tpu.concatenate %69, %67 in 1 : vector<2x32xf32>, vector<2x64xf32> -> vector<2x96xf32>
    %c0_23 = arith.constant 0 : index
    %c0_24 = arith.constant 0 : index
    %71 = vector.load %arg1[%c0_23, %c0_24] : memref<96x256xf32, #tpu.memory_space<vmem>>, vector<96x256xf32>
    %cst_25 = arith.constant dense<0.000000e+00> : vector<2x256xf32>
    %72 = tpu.matmul %70, %71, %cst_25 {dimension_numbers = #tpu.dot_dimension_numbers<[1], [0], [0], [1], [0, 0, 1, 1], [], []>} : vector<2x96xf32>, vector<96x256xf32>, vector<2x256xf32> -> vector<2x256xf32>
    %c0_26 = arith.constant 0 : index
    %c0_27 = arith.constant 0 : index
    %73 = vector.load %arg2[%c0_26, %c0_27] : memref<1x256xf32, #tpu.memory_space<vmem>>, vector<1x256xf32>
    %74 = vector.broadcast %73 : vector<1x256xf32> to vector<2x256xf32>
    %75 = arith.addf %72, %74 : vector<2x256xf32>
    %cst_28 = arith.constant 5.000000e-01 : f32
    %76 = vector.broadcast %cst_28 : f32 to vector<2x256xf32>
    %77 = arith.mulf %76, %75 : vector<2x256xf32>
    %78 = arith.select %5, %75, %77 : vector<2x256xi1>, vector<2x256xf32>
    %79 = math.tanh %78 : vector<2x256xf32>
    %cst_29 = arith.constant 5.000000e-01 : f32
    %80 = vector.broadcast %cst_29 : f32 to vector<2x256xf32>
    %81 = arith.mulf %80, %79 : vector<2x256xf32>
    %cst_30 = arith.constant 5.000000e-01 : f32
    %82 = vector.broadcast %cst_30 : f32 to vector<2x256xf32>
    %83 = arith.addf %81, %82 : vector<2x256xf32>
    %84 = arith.select %5, %79, %83 : vector<2x256xi1>, vector<2x256xf32>
    %85 = vector.extract_strided_slice %84 {offsets = [0, 0], sizes = [2, 64], strides = [1, 1]} : vector<2x256xf32> to vector<2x64xf32>
    %86 = vector.extract_strided_slice %84 {offsets = [0, 64], sizes = [2, 64], strides = [1, 1]} : vector<2x256xf32> to vector<2x64xf32>
    %87 = vector.extract_strided_slice %84 {offsets = [0, 128], sizes = [2, 64], strides = [1, 1]} : vector<2x256xf32> to vector<2x64xf32>
    %88 = vector.extract_strided_slice %84 {offsets = [0, 192], sizes = [2, 64], strides = [1, 1]} : vector<2x256xf32> to vector<2x64xf32>
    %89 = arith.mulf %86, %65 : vector<2x64xf32>
    %90 = arith.mulf %85, %87 : vector<2x64xf32>
    %91 = arith.addf %89, %90 : vector<2x64xf32>
    %92 = math.tanh %91 : vector<2x64xf32>
    %93 = arith.mulf %88, %92 : vector<2x64xf32>
    %c3 = arith.constant 3 : index
    %c0_31 = arith.constant 0 : index
    %c0_32 = arith.constant 0 : index
    %94 = vector.load %arg0[%c3, %c0_31, %c0_32] : memref<8x2x32xf32, #tpu.memory_space<vmem>>, vector<1x2x32xf32>
    %95 = vector.shape_cast %94 : vector<1x2x32xf32> to vector<2x32xf32>
    %96 = tpu.concatenate %95, %93 in 1 : vector<2x32xf32>, vector<2x64xf32> -> vector<2x96xf32>
    %c0_33 = arith.constant 0 : index
    %c0_34 = arith.constant 0 : index
    %97 = vector.load %arg1[%c0_33, %c0_34] : memref<96x256xf32, #tpu.memory_space<vmem>>, vector<96x256xf32>
    %cst_35 = arith.constant dense<0.000000e+00> : vector<2x256xf32>
    %98 = tpu.matmul %96, %97, %cst_35 {dimension_numbers = #tpu.dot_dimension_numbers<[1], [0], [0], [1], [0, 0, 1, 1], [], []>} : vector<2x96xf32>, vector<96x256xf32>, vector<2x256xf32> -> vector<2x256xf32>
    %c0_36 = arith.constant 0 : index
    %c0_37 = arith.constant 0 : index
    %99 = vector.load %arg2[%c0_36, %c0_37] : memref<1x256xf32, #tpu.memory_space<vmem>>, vector<1x256xf32>
    %100 = vector.broadcast %99 : vector<1x256xf32> to vector<2x256xf32>
    %101 = arith.addf %98, %100 : vector<2x256xf32>
    %cst_38 = arith.constant 5.000000e-01 : f32
    %102 = vector.broadcast %cst_38 : f32 to vector<2x256xf32>
    %103 = arith.mulf %102, %101 : vector<2x256xf32>
    %104 = arith.select %5, %101, %103 : vector<2x256xi1>, vector<2x256xf32>
    %105 = math.tanh %104 : vector<2x256xf32>
    %cst_39 = arith.constant 5.000000e-01 : f32
    %106 = vector.broadcast %cst_39 : f32 to vector<2x256xf32>
    %107 = arith.mulf %106, %105 : vector<2x256xf32>
    %cst_40 = arith.constant 5.000000e-01 : f32
    %108 = vector.broadcast %cst_40 : f32 to vector<2x256xf32>
    %109 = arith.addf %107, %108 : vector<2x256xf32>
    %110 = arith.select %5, %105, %109 : vector<2x256xi1>, vector<2x256xf32>
    %111 = vector.extract_strided_slice %110 {offsets = [0, 0], sizes = [2, 64], strides = [1, 1]} : vector<2x256xf32> to vector<2x64xf32>
    %112 = vector.extract_strided_slice %110 {offsets = [0, 64], sizes = [2, 64], strides = [1, 1]} : vector<2x256xf32> to vector<2x64xf32>
    %113 = vector.extract_strided_slice %110 {offsets = [0, 128], sizes = [2, 64], strides = [1, 1]} : vector<2x256xf32> to vector<2x64xf32>
    %114 = vector.extract_strided_slice %110 {offsets = [0, 192], sizes = [2, 64], strides = [1, 1]} : vector<2x256xf32> to vector<2x64xf32>
    %115 = arith.mulf %112, %91 : vector<2x64xf32>
    %116 = arith.mulf %111, %113 : vector<2x64xf32>
    %117 = arith.addf %115, %116 : vector<2x64xf32>
    %118 = math.tanh %117 : vector<2x64xf32>
    %119 = arith.mulf %114, %118 : vector<2x64xf32>
    %c4 = arith.constant 4 : index
    %c0_41 = arith.constant 0 : index
    %c0_42 = arith.constant 0 : index
    %120 = vector.load %arg0[%c4, %c0_41, %c0_42] : memref<8x2x32xf32, #tpu.memory_space<vmem>>, vector<1x2x32xf32>
    %121 = vector.shape_cast %120 : vector<1x2x32xf32> to vector<2x32xf32>
    %122 = tpu.concatenate %121, %119 in 1 : vector<2x32xf32>, vector<2x64xf32> -> vector<2x96xf32>
    %c0_43 = arith.constant 0 : index
    %c0_44 = arith.constant 0 : index
    %123 = vector.load %arg1[%c0_43, %c0_44] : memref<96x256xf32, #tpu.memory_space<vmem>>, vector<96x256xf32>
    %cst_45 = arith.constant dense<0.000000e+00> : vector<2x256xf32>
    %124 = tpu.matmul %122, %123, %cst_45 {dimension_numbers = #tpu.dot_dimension_numbers<[1], [0], [0], [1], [0, 0, 1, 1], [], []>} : vector<2x96xf32>, vector<96x256xf32>, vector<2x256xf32> -> vector<2x256xf32>
    %c0_46 = arith.constant 0 : index
    %c0_47 = arith.constant 0 : index
    %125 = vector.load %arg2[%c0_46, %c0_47] : memref<1x256xf32, #tpu.memory_space<vmem>>, vector<1x256xf32>
    %126 = vector.broadcast %125 : vector<1x256xf32> to vector<2x256xf32>
    %127 = arith.addf %124, %126 : vector<2x256xf32>
    %cst_48 = arith.constant 5.000000e-01 : f32
    %128 = vector.broadcast %cst_48 : f32 to vector<2x256xf32>
    %129 = arith.mulf %128, %127 : vector<2x256xf32>
    %130 = arith.select %5, %127, %129 : vector<2x256xi1>, vector<2x256xf32>
    %131 = math.tanh %130 : vector<2x256xf32>
    %cst_49 = arith.constant 5.000000e-01 : f32
    %132 = vector.broadcast %cst_49 : f32 to vector<2x256xf32>
    %133 = arith.mulf %132, %131 : vector<2x256xf32>
    %cst_50 = arith.constant 5.000000e-01 : f32
    %134 = vector.broadcast %cst_50 : f32 to vector<2x256xf32>
    %135 = arith.addf %133, %134 : vector<2x256xf32>
    %136 = arith.select %5, %131, %135 : vector<2x256xi1>, vector<2x256xf32>
    %137 = vector.extract_strided_slice %136 {offsets = [0, 0], sizes = [2, 64], strides = [1, 1]} : vector<2x256xf32> to vector<2x64xf32>
    %138 = vector.extract_strided_slice %136 {offsets = [0, 64], sizes = [2, 64], strides = [1, 1]} : vector<2x256xf32> to vector<2x64xf32>
    %139 = vector.extract_strided_slice %136 {offsets = [0, 128], sizes = [2, 64], strides = [1, 1]} : vector<2x256xf32> to vector<2x64xf32>
    %140 = vector.extract_strided_slice %136 {offsets = [0, 192], sizes = [2, 64], strides = [1, 1]} : vector<2x256xf32> to vector<2x64xf32>
    %141 = arith.mulf %138, %117 : vector<2x64xf32>
    %142 = arith.mulf %137, %139 : vector<2x64xf32>
    %143 = arith.addf %141, %142 : vector<2x64xf32>
    %144 = math.tanh %143 : vector<2x64xf32>
    %145 = arith.mulf %140, %144 : vector<2x64xf32>
    %c5 = arith.constant 5 : index
    %c0_51 = arith.constant 0 : index
    %c0_52 = arith.constant 0 : index
    %146 = vector.load %arg0[%c5, %c0_51, %c0_52] : memref<8x2x32xf32, #tpu.memory_space<vmem>>, vector<1x2x32xf32>
    %147 = vector.shape_cast %146 : vector<1x2x32xf32> to vector<2x32xf32>
    %148 = tpu.concatenate %147, %145 in 1 : vector<2x32xf32>, vector<2x64xf32> -> vector<2x96xf32>
    %c0_53 = arith.constant 0 : index
    %c0_54 = arith.constant 0 : index
    %149 = vector.load %arg1[%c0_53, %c0_54] : memref<96x256xf32, #tpu.memory_space<vmem>>, vector<96x256xf32>
    %cst_55 = arith.constant dense<0.000000e+00> : vector<2x256xf32>
    %150 = tpu.matmul %148, %149, %cst_55 {dimension_numbers = #tpu.dot_dimension_numbers<[1], [0], [0], [1], [0, 0, 1, 1], [], []>} : vector<2x96xf32>, vector<96x256xf32>, vector<2x256xf32> -> vector<2x256xf32>
    %c0_56 = arith.constant 0 : index
    %c0_57 = arith.constant 0 : index
    %151 = vector.load %arg2[%c0_56, %c0_57] : memref<1x256xf32, #tpu.memory_space<vmem>>, vector<1x256xf32>
    %152 = vector.broadcast %151 : vector<1x256xf32> to vector<2x256xf32>
    %153 = arith.addf %150, %152 : vector<2x256xf32>
    %cst_58 = arith.constant 5.000000e-01 : f32
    %154 = vector.broadcast %cst_58 : f32 to vector<2x256xf32>
    %155 = arith.mulf %154, %153 : vector<2x256xf32>
    %156 = arith.select %5, %153, %155 : vector<2x256xi1>, vector<2x256xf32>
    %157 = math.tanh %156 : vector<2x256xf32>
    %cst_59 = arith.constant 5.000000e-01 : f32
    %158 = vector.broadcast %cst_59 : f32 to vector<2x256xf32>
    %159 = arith.mulf %158, %157 : vector<2x256xf32>
    %cst_60 = arith.constant 5.000000e-01 : f32
    %160 = vector.broadcast %cst_60 : f32 to vector<2x256xf32>
    %161 = arith.addf %159, %160 : vector<2x256xf32>
    %162 = arith.select %5, %157, %161 : vector<2x256xi1>, vector<2x256xf32>
    %163 = vector.extract_strided_slice %162 {offsets = [0, 0], sizes = [2, 64], strides = [1, 1]} : vector<2x256xf32> to vector<2x64xf32>
    %164 = vector.extract_strided_slice %162 {offsets = [0, 64], sizes = [2, 64], strides = [1, 1]} : vector<2x256xf32> to vector<2x64xf32>
    %165 = vector.extract_strided_slice %162 {offsets = [0, 128], sizes = [2, 64], strides = [1, 1]} : vector<2x256xf32> to vector<2x64xf32>
    %166 = vector.extract_strided_slice %162 {offsets = [0, 192], sizes = [2, 64], strides = [1, 1]} : vector<2x256xf32> to vector<2x64xf32>
    %167 = arith.mulf %164, %143 : vector<2x64xf32>
    %168 = arith.mulf %163, %165 : vector<2x64xf32>
    %169 = arith.addf %167, %168 : vector<2x64xf32>
    %170 = math.tanh %169 : vector<2x64xf32>
    %171 = arith.mulf %166, %170 : vector<2x64xf32>
    %c6 = arith.constant 6 : index
    %c0_61 = arith.constant 0 : index
    %c0_62 = arith.constant 0 : index
    %172 = vector.load %arg0[%c6, %c0_61, %c0_62] : memref<8x2x32xf32, #tpu.memory_space<vmem>>, vector<1x2x32xf32>
    %173 = vector.shape_cast %172 : vector<1x2x32xf32> to vector<2x32xf32>
    %174 = tpu.concatenate %173, %171 in 1 : vector<2x32xf32>, vector<2x64xf32> -> vector<2x96xf32>
    %c0_63 = arith.constant 0 : index
    %c0_64 = arith.constant 0 : index
    %175 = vector.load %arg1[%c0_63, %c0_64] : memref<96x256xf32, #tpu.memory_space<vmem>>, vector<96x256xf32>
    %cst_65 = arith.constant dense<0.000000e+00> : vector<2x256xf32>
    %176 = tpu.matmul %174, %175, %cst_65 {dimension_numbers = #tpu.dot_dimension_numbers<[1], [0], [0], [1], [0, 0, 1, 1], [], []>} : vector<2x96xf32>, vector<96x256xf32>, vector<2x256xf32> -> vector<2x256xf32>
    %c0_66 = arith.constant 0 : index
    %c0_67 = arith.constant 0 : index
    %177 = vector.load %arg2[%c0_66, %c0_67] : memref<1x256xf32, #tpu.memory_space<vmem>>, vector<1x256xf32>
    %178 = vector.broadcast %177 : vector<1x256xf32> to vector<2x256xf32>
    %179 = arith.addf %176, %178 : vector<2x256xf32>
    %cst_68 = arith.constant 5.000000e-01 : f32
    %180 = vector.broadcast %cst_68 : f32 to vector<2x256xf32>
    %181 = arith.mulf %180, %179 : vector<2x256xf32>
    %182 = arith.select %5, %179, %181 : vector<2x256xi1>, vector<2x256xf32>
    %183 = math.tanh %182 : vector<2x256xf32>
    %cst_69 = arith.constant 5.000000e-01 : f32
    %184 = vector.broadcast %cst_69 : f32 to vector<2x256xf32>
    %185 = arith.mulf %184, %183 : vector<2x256xf32>
    %cst_70 = arith.constant 5.000000e-01 : f32
    %186 = vector.broadcast %cst_70 : f32 to vector<2x256xf32>
    %187 = arith.addf %185, %186 : vector<2x256xf32>
    %188 = arith.select %5, %183, %187 : vector<2x256xi1>, vector<2x256xf32>
    %189 = vector.extract_strided_slice %188 {offsets = [0, 0], sizes = [2, 64], strides = [1, 1]} : vector<2x256xf32> to vector<2x64xf32>
    %190 = vector.extract_strided_slice %188 {offsets = [0, 64], sizes = [2, 64], strides = [1, 1]} : vector<2x256xf32> to vector<2x64xf32>
    %191 = vector.extract_strided_slice %188 {offsets = [0, 128], sizes = [2, 64], strides = [1, 1]} : vector<2x256xf32> to vector<2x64xf32>
    %192 = vector.extract_strided_slice %188 {offsets = [0, 192], sizes = [2, 64], strides = [1, 1]} : vector<2x256xf32> to vector<2x64xf32>
    %193 = arith.mulf %190, %169 : vector<2x64xf32>
    %194 = arith.mulf %189, %191 : vector<2x64xf32>
    %195 = arith.addf %193, %194 : vector<2x64xf32>
    %196 = math.tanh %195 : vector<2x64xf32>
    %197 = arith.mulf %192, %196 : vector<2x64xf32>
    %c7 = arith.constant 7 : index
    %c0_71 = arith.constant 0 : index
    %c0_72 = arith.constant 0 : index
    %198 = vector.load %arg0[%c7, %c0_71, %c0_72] : memref<8x2x32xf32, #tpu.memory_space<vmem>>, vector<1x2x32xf32>
    %199 = vector.shape_cast %198 : vector<1x2x32xf32> to vector<2x32xf32>
    %200 = tpu.concatenate %199, %197 in 1 : vector<2x32xf32>, vector<2x64xf32> -> vector<2x96xf32>
    %c0_73 = arith.constant 0 : index
    %c0_74 = arith.constant 0 : index
    %201 = vector.load %arg1[%c0_73, %c0_74] : memref<96x256xf32, #tpu.memory_space<vmem>>, vector<96x256xf32>
    %cst_75 = arith.constant dense<0.000000e+00> : vector<2x256xf32>
    %202 = tpu.matmul %200, %201, %cst_75 {dimension_numbers = #tpu.dot_dimension_numbers<[1], [0], [0], [1], [0, 0, 1, 1], [], []>} : vector<2x96xf32>, vector<96x256xf32>, vector<2x256xf32> -> vector<2x256xf32>
    %c0_76 = arith.constant 0 : index
    %c0_77 = arith.constant 0 : index
    %203 = vector.load %arg2[%c0_76, %c0_77] : memref<1x256xf32, #tpu.memory_space<vmem>>, vector<1x256xf32>
    %204 = vector.broadcast %203 : vector<1x256xf32> to vector<2x256xf32>
    %205 = arith.addf %202, %204 : vector<2x256xf32>
    %cst_78 = arith.constant 5.000000e-01 : f32
    %206 = vector.broadcast %cst_78 : f32 to vector<2x256xf32>
    %207 = arith.mulf %206, %205 : vector<2x256xf32>
    %208 = arith.select %5, %205, %207 : vector<2x256xi1>, vector<2x256xf32>
    %209 = math.tanh %208 : vector<2x256xf32>
    %cst_79 = arith.constant 5.000000e-01 : f32
    %210 = vector.broadcast %cst_79 : f32 to vector<2x256xf32>
    %211 = arith.mulf %210, %209 : vector<2x256xf32>
    %cst_80 = arith.constant 5.000000e-01 : f32
    %212 = vector.broadcast %cst_80 : f32 to vector<2x256xf32>
    %213 = arith.addf %211, %212 : vector<2x256xf32>
    %214 = arith.select %5, %209, %213 : vector<2x256xi1>, vector<2x256xf32>
    %215 = vector.extract_strided_slice %214 {offsets = [0, 0], sizes = [2, 64], strides = [1, 1]} : vector<2x256xf32> to vector<2x64xf32>
    %216 = vector.extract_strided_slice %214 {offsets = [0, 64], sizes = [2, 64], strides = [1, 1]} : vector<2x256xf32> to vector<2x64xf32>
    %217 = vector.extract_strided_slice %214 {offsets = [0, 128], sizes = [2, 64], strides = [1, 1]} : vector<2x256xf32> to vector<2x64xf32>
    %218 = vector.extract_strided_slice %214 {offsets = [0, 192], sizes = [2, 64], strides = [1, 1]} : vector<2x256xf32> to vector<2x64xf32>
    %219 = arith.mulf %216, %195 : vector<2x64xf32>
    %220 = arith.mulf %215, %217 : vector<2x64xf32>
    %221 = arith.addf %219, %220 : vector<2x64xf32>
    %222 = math.tanh %221 : vector<2x64xf32>
    %223 = arith.mulf %218, %222 : vector<2x64xf32>
    %cst_81 = arith.constant 0.000000e+00 : f32
    %224 = vector.broadcast %cst_81 : f32 to vector<2x32xf32>
    %225 = tpu.concatenate %224, %223 in 1 : vector<2x32xf32>, vector<2x64xf32> -> vector<2x96xf32>
    %c0_82 = arith.constant 0 : index
    %c0_83 = arith.constant 0 : index
    %226 = vector.load %arg1[%c0_82, %c0_83] : memref<96x256xf32, #tpu.memory_space<vmem>>, vector<96x256xf32>
    %cst_84 = arith.constant dense<0.000000e+00> : vector<2x256xf32>
    %227 = tpu.matmul %225, %226, %cst_84 {dimension_numbers = #tpu.dot_dimension_numbers<[1], [0], [0], [1], [0, 0, 1, 1], [], []>} : vector<2x96xf32>, vector<96x256xf32>, vector<2x256xf32> -> vector<2x256xf32>
    %c0_85 = arith.constant 0 : index
    %c0_86 = arith.constant 0 : index
    %228 = vector.load %arg2[%c0_85, %c0_86] : memref<1x256xf32, #tpu.memory_space<vmem>>, vector<1x256xf32>
    %229 = vector.broadcast %228 : vector<1x256xf32> to vector<2x256xf32>
    %230 = arith.addf %227, %229 : vector<2x256xf32>
    %cst_87 = arith.constant 5.000000e-01 : f32
    %231 = vector.broadcast %cst_87 : f32 to vector<2x256xf32>
    %232 = arith.mulf %231, %230 : vector<2x256xf32>
    %233 = arith.select %5, %230, %232 : vector<2x256xi1>, vector<2x256xf32>
    %234 = math.tanh %233 : vector<2x256xf32>
    %cst_88 = arith.constant 5.000000e-01 : f32
    %235 = vector.broadcast %cst_88 : f32 to vector<2x256xf32>
    %236 = arith.mulf %235, %234 : vector<2x256xf32>
    %cst_89 = arith.constant 5.000000e-01 : f32
    %237 = vector.broadcast %cst_89 : f32 to vector<2x256xf32>
    %238 = arith.addf %236, %237 : vector<2x256xf32>
    %239 = arith.select %5, %234, %238 : vector<2x256xi1>, vector<2x256xf32>
    %240 = vector.extract_strided_slice %239 {offsets = [0, 0], sizes = [2, 64], strides = [1, 1]} : vector<2x256xf32> to vector<2x64xf32>
    %241 = vector.extract_strided_slice %239 {offsets = [0, 64], sizes = [2, 64], strides = [1, 1]} : vector<2x256xf32> to vector<2x64xf32>
    %242 = vector.extract_strided_slice %239 {offsets = [0, 128], sizes = [2, 64], strides = [1, 1]} : vector<2x256xf32> to vector<2x64xf32>
    %243 = vector.extract_strided_slice %239 {offsets = [0, 192], sizes = [2, 64], strides = [1, 1]} : vector<2x256xf32> to vector<2x64xf32>
    %244 = arith.mulf %241, %221 : vector<2x64xf32>
    %245 = arith.mulf %240, %242 : vector<2x64xf32>
    %246 = arith.addf %244, %245 : vector<2x64xf32>
    %247 = math.tanh %246 : vector<2x64xf32>
    %248 = arith.mulf %243, %247 : vector<2x64xf32>
    %c32_i32_90 = arith.constant 32 : i32
    %249 = vector.broadcast %c32_i32_90 : i32 to vector<2x64xi32>
    %250 = arith.cmpi sge, %6, %249 : vector<2x64xi32>
    %c64_i32 = arith.constant 64 : i32
    %251 = vector.broadcast %c64_i32 : i32 to vector<2x64xi32>
    %252 = arith.cmpi slt, %6, %251 : vector<2x64xi32>
    %253 = arith.andi %250, %252 : vector<2x64xi1>
    %254 = arith.select %253, %248, %223 : vector<2x64xi1>, vector<2x64xf32>
    %c0_91 = arith.constant 0 : index
    %c0_92 = arith.constant 0 : index
    %255 = vector.load %arg3[%c0_91, %c0_92] : memref<1x64xf32, #tpu.memory_space<vmem>>, vector<1x64xf32>
    %256 = vector.broadcast %255 : vector<1x64xf32> to vector<2x64xf32>
    %257 = arith.mulf %254, %256 : vector<2x64xf32>
    %cst_93 = arith.constant dense<0.000000e+00> : vector<2xf32>
    %258 = vector.multi_reduction <add>, %257, %cst_93 [1] : vector<2x64xf32> to vector<2xf32>
    %259 = vector.shape_cast %258 : vector<2xf32> to vector<2x1xf32>
    %c0_94 = arith.constant 0 : index
    %c0_95 = arith.constant 0 : index
    %260 = memref.load %arg4[%c0_94, %c0_95] : memref<1x1xf32, #tpu.memory_space<smem>>
    %261 = vector.broadcast %260 : f32 to vector<2x1xf32>
    %262 = arith.addf %259, %261 : vector<2x1xf32>
    %c0_96 = arith.constant 0 : index
    %c0_97 = arith.constant 0 : index
    %263 = vector.load %arg5[%c0_96, %c0_97] : memref<2x1xf32, #tpu.memory_space<vmem>>, vector<2x1xf32>
    tpu.vector_store %arg5[%c0_96, %c0_97], %262 {strides = array<i32>} : memref<2x1xf32, #tpu.memory_space<vmem>>, vector<2x1xf32>,
    return
  }
}

</mosaic_0001>

<bundles_post_ra>
// kernel: tpu_custom_call.1
= control target key start
LH: loop header
LB: loop body
LE: loop exit
PB: predicated region body
PF: predicated region fallthrough
CT: control target
= control target key end

     0   :  { %11 = vsyncpa [#allocation4], 0  ;;  %s1720_s0 = inlined_call_operand.hbm [shape: f32[8,2,32], index: 0, kind: input, shape index: {}]   ;;  %s1721_s1 = inlined_call_operand.hbm [shape: f32[96,256], index: 1, kind: input, shape index: {}]   ;;  %s1722_s2 = inlined_call_operand.vmem [shape: f32[1,256], index: 2, kind: input, shape index: {}]   ;;  %s1723_s3 = inlined_call_operand.vmem [shape: f32[1,64], index: 3, kind: input, shape index: {}]   ;;  %s1724_s4 = inlined_call_operand.<no memory space> [shape: f32[1,1], index: 4, kind: input, shape index: {}]   ;;  %s1725_s5 = inlined_call_operand.vmem [shape: f32[2,1], index: 5, kind: output, shape index: {}]  }
   0x1   :  { %12 = vsyncpa [#allocation6], 0  ;;  %s1395_s18 = smov [#allocation3]   ;;  %s1347_s22 = scalar_lea.hbm %s1720_s0, 256 }
   0x2   :  { %s18_s19 = sshll.u32 %s1395_s18, 4  ;;  %p1348_p0 = scmp.ne.s32.totalorder %s1720_s0, %s1347_s22  ;;  %s19_s19 = int_to_ptr.vmem [resolvable:$true] %s18_s19 }
   0x3   :  { %p1351_p1 = scmp.lt.u32.totalorder %s1347_s22, %s1720_s0 }
   0x5   :  { %p1353_p2 = pnand %p1351_p1, %p1348_p0 }
   0x7   :  { %1356 = shalt.err (!%p1353_p2)
}
   0x8   :  { %s1357_s27 = scalar_lea.vmem %s19_s19, 256  ;;  %p1362_p4 = scmp.lt.s32.totalorder %s19_s19, %s19_s19 }
   0x9   :  { %p1358_p3 = scmp.ne.s32.totalorder %s19_s19, %s1357_s27  ;;  %p1363_p5 = scmp.lt.s32.totalorder %s1357_s27, %s1357_s27 }
   0xb   :  { %p1364_p6 = por %p1363_p5, %p1362_p4 }
   0xd   :  { %p1365_p7 = pnand %p1364_p6, %p1358_p3 }
   0xf   :  { %1368 = shalt.err (!%p1365_p7)
}
  0x10   :  { %s1396_s28 = smov 32   ;;  %s1397_s29 = smov 2  }
  0x11   :  { %24 = dma.hbm_to_vmem [thread:$0]  %s1720_s0, 256, %s19_s19, [#allocation4], %s1396_s28, %s1396_s28, %s1397_s29  }
  0x12   :  { %s1398_s7 = smov [#allocation5]   ;;  %s1369_s11 = scalar_lea.hbm %s1721_s1, 3072 }
  0x13   :  { %s30_s8 = sshll.u32 %s1398_s7, 4  ;;  %p1370_p8 = scmp.ne.s32.totalorder %s1721_s1, %s1369_s11  ;;  %s31_s8 = int_to_ptr.vmem [resolvable:$true] %s30_s8 }
  0x14   :  { %p1373_p9 = scmp.lt.u32.totalorder %s1369_s11, %s1721_s1 }
  0x16   :  { %p1375_p10 = pnand %p1373_p9, %p1370_p8 }
  0x18   :  { %1378 = shalt.err (!%p1375_p10)
}
  0x19   :  { %s1379_s16 = scalar_lea.vmem %s31_s8, 3072  ;;  %p1384_p12 = scmp.lt.s32.totalorder %s31_s8, %s31_s8 }
  0x1a   :  { %p1380_p11 = scmp.ne.s32.totalorder %s31_s8, %s1379_s16  ;;  %p1385_p13 = scmp.lt.s32.totalorder %s1379_s16, %s1379_s16 }
  0x1c   :  { %p1386_p0 = por %p1385_p13, %p1384_p12 }
  0x1e   :  { %p1387_p1 = pnand %p1386_p0, %p1380_p11 }
  0x20   :  { %1390 = shalt.err (!%p1387_p1)
}
  0x21   :  { %s1399_s0 = smov 256   ;;  %s1400_s17 = smov 16  }
  0x22   :  { %36 = dma.hbm_to_vmem [thread:$0]  %s1721_s1, 3072, %s31_s8, [#allocation6], %s1399_s0, %s1399_s0, %s1400_s17  }
  0x23   :  { %1391 = dma.done.wait [#allocation4], 256  }
  0x24   :  { %1392 = vsyncadd [#allocation4], 4294967040 }
  0x25   :  { %1393 = dma.done.wait [#allocation6], 3072  }
  0x26   :  { %1394 = vsyncadd [#allocation6], 4294964224  ;;  %v1401_v0 = vmov 0.0   ;;  %v62_v1 = vld [vmem:[#allocation5 + $0x8] sm:$0xff]  ;;  %v64_v2 = vld [vmem:[#allocation5 + $0x18] sm:$0xff]  ;;  %vm59_vm0 = vcmask 261120   ;;  %v49_v39 = vlaneseq }
  0x27   :  { %165 = vmatprep.mubr.f32.mxu0 %v1401_v0  ;;  %280 = vmatprep.mubr.f32.mxu1 %v1401_v0  ;;  %v61_v3 = vld [vmem:[#allocation5] sm:$0xff]  ;;  %v1462_v4 = vpack.c.bf16 %v64_v2, %v62_v1  ;;  %v63_v5 = vld [vmem:[#allocation5 + $0x10] sm:$0xff]  ;;  %v66_v6 = vld [vmem:[#allocation5 + $0x28] sm:$0xff]  ;;  %vm97_vm1 = vcmask 785408   ;;  %s1403_s21 = smov 96   ;;  %vm1043_vm7 = vcmask 517120  }
  0x28   :  { %v68_v7 = vld [vmem:[#allocation5 + $0x38] sm:$0xff]  ;;  %v1464_v8 = vpack.c.bf16 %v63_v5, %v61_v3  ;;  %v65_v10 = vld [vmem:[#allocation5 + $0x20] sm:$0xff]  ;;  %v67_v11 = vld [vmem:[#allocation5 + $0x30] sm:$0xff]  ;;  %v88_v40 = vshrl.u32 %v49_v39, 7  ;;  %v1530_v44 = vand.u32 127, %v49_v39  ;;  %vm1050_vm8 = vcmask 1024  }
  0x29   :  { %v1466_v9 = vpack.c.bf16 %v68_v7, %v66_v6  ;;  %v70_v12 = vld [vmem:[#allocation5 + $0x48] sm:$0xff]  ;;  %1069 = vmatprep.subr.bf16.mxu0 %v1462_v4  ;;  %v72_v13 = vld [vmem:[#allocation5 + $0x58] sm:$0xff]  ;;  %1093 = vmatprep.subr.bf16.mxu1 %v1462_v4  ;;  %v1471_v14 = vpack.c.bf16 %v67_v11, %v65_v10  ;;  %v69_v16 = vld [vmem:[#allocation5 + $0x40] sm:$0xff] }
  0x2a   :  { %1071 = vmatpush1.bf16.msra.mxu0 %v1464_v8  ;;  %1095 = vmatpush1.bf16.msra.mxu1 %v1464_v8  ;;  %v1475_v15 = vpack.c.bf16 %v72_v13, %v70_v12  ;;  %v71_v17 = vld [vmem:[#allocation5 + $0x50] sm:$0xff]  ;;  %v74_v18 = vld [vmem:[#allocation5 + $0x68] sm:$0xff]  ;;  %v76_v19 = vld [vmem:[#allocation5 + $0x78] sm:$0xff]  ;;  %v89_v41 = vsub.s32 0, %v88_v40  ;;  %v93_v43 = vsub.s32 1, %v88_v40  ;;  %v1537_v47 = vadd.s32 128, %v1530_v44 }
  0x2b   :  { %1073 = vmatprep.subr.bf16.mxu0 %v1466_v9  ;;  %1097 = vmatprep.subr.bf16.mxu1 %v1466_v9  ;;  %v1479_v20 = vpack.c.bf16 %v71_v17, %v69_v16  ;;  %v1483_v21 = vpack.c.bf16 %v76_v19, %v74_v18  ;;  %v73_v22 = vld [vmem:[#allocation5 + $0x60] sm:$0xff]  ;;  %v75_v23 = vld [vmem:[#allocation5 + $0x70] sm:$0xff]  ;;  %v78_v24 = vld [vmem:[#allocation5 + $0x88] sm:$0xff]  ;;  %vm194_vm3 = vcmp.lt.s32.totalorder %v1530_v44, 32  ;;  %vm1024_vm4 = vcmp.ge.s32.totalorder %v1530_v44, 32 }
  0x2c   :  { %v80_v25 = vld [vmem:[#allocation5 + $0x98] sm:$0xff]  ;;  %v1487_v26 = vpack.c.bf16 %v75_v23, %v73_v22  ;;  %v77_v28 = vld [vmem:[#allocation5 + $0x80] sm:$0xff]  ;;  %v79_v29 = vld [vmem:[#allocation5 + $0x90] sm:$0xff]  ;;  %vm55_vm2 = vcmp.lt.s32.totalorder %v1537_v47, 192  ;;  %vm1025_vm5 = vcmp.lt.s32.totalorder %v1530_v44, 64 }
  0x2d   :  { %v1491_v27 = vpack.c.bf16 %v80_v25, %v78_v24  ;;  %v82_v30 = vld [vmem:[#allocation5 + $0xa8] sm:$0xff]  ;;  %v84_v31 = vld [vmem:[#allocation5 + $0xb8] sm:$0xff]  ;;  %v1495_v32 = vpack.c.bf16 %v79_v29, %v77_v28  ;;  %v81_v34 = vld [vmem:[#allocation5 + $0xa0] sm:$0xff] }
  0x2e   :  { %1075 = vmatpush1.bf16.msra.mxu0 %v1471_v14  ;;  %1099 = vmatpush1.bf16.msra.mxu1 %v1471_v14  ;;  %v1499_v33 = vpack.c.bf16 %v84_v31, %v82_v30  ;;  %v83_v35 = vld [vmem:[#allocation5 + $0xb0] sm:$0xff]  ;;  %vm1026_vm6 = vmand %vm1024_vm4, %vm1025_vm5 }
  0x2f   :  { %1077 = vmatprep.subr.bf16.mxu0 %v1475_v15  ;;  %1101 = vmatprep.subr.bf16.mxu1 %v1475_v15  ;;  %v1503_v36 = vpack.c.bf16 %v83_v35, %v81_v34  ;;  %v58_v37 = vld [vmem:[#allocation3] sm:$0x3]  ;;  %v207_v10 = vld [vmem:[#allocation3 + $0x2] sm:$0x3] }
  0x30   :  { %v60_v38 = vsel %vm59_vm0, %v58_v37, 0.0  ;;  %v85_v42 = vld [vmem:[%s1722_s2] sm:$0x3]  ;;  %s1402_s2 = smov 64  }
  0x31   :  { %v1532_v45 = vrot.slane %v85_v42, %v89_v41  ;;  %v1534_v46 = vrot.slane %v85_v42, %v93_v43  ;;  %v1067_v47 = vld [vmem:[%s1723_s3] ss:$0 sm:$0xff] }
  0x32   :  { %1079 = vmatpush1.bf16.msra.mxu0 %v1479_v20  ;;  %1103 = vmatpush1.bf16.msra.mxu1 %v1479_v20 }
  0x33   :  { %1081 = vmatprep.subr.bf16.mxu0 %v1483_v21  ;;  %1105 = vmatprep.subr.bf16.mxu1 %v1483_v21 }
  0x36   :  { %1083 = vmatpush1.bf16.msra.mxu0 %v1487_v26  ;;  %1107 = vmatpush1.bf16.msra.mxu1 %v1487_v26 }
  0x37   :  { %1085 = vmatprep.subr.bf16.mxu0 %v1491_v27  ;;  %1109 = vmatprep.subr.bf16.mxu1 %v1491_v27 }
  0x3a   :  { %1087 = vmatpush1.bf16.msra.mxu0 %v1495_v32  ;;  %1111 = vmatpush1.bf16.msra.mxu1 %v1495_v32 }
  0x3b   :  { %1089 = vmatprep.subr.bf16.mxu0 %v1499_v33  ;;  %1113 = vmatprep.subr.bf16.mxu1 %v1499_v33 }
  0x3e   :  { %1091 = vmatpush1.bf16.msra.mxu0 %v1503_v36  ;;  %1115 = vmatpush1.bf16.msra.mxu1 %v1503_v36 }
  0x3f   :  { %1117 = vmatprep.subr.bf16.mxu0 %v1462_v4  ;;  %1141 = vmatprep.subr.bf16.mxu1 %v1462_v4 }
  0x41   :  { %1058 = vmatmul.mubr.msk.f32.vlgmr.msra.gmra.mrb[0].mxu0 %vm97_vm1, %v60_v38 }
  0x42   :  { %1119 = vmatpush1.bf16.msra.mxu0 %v1464_v8  ;;  %386 = vmatprep.mubr.f32.mxu0 %v1401_v0 }
  0x43   :  { %1121 = vmatprep.subr.bf16.mxu0 %v1466_v9 }
  0x46   :  { %1123 = vmatpush1.bf16.msra.mxu0 %v1471_v14 }
  0x47   :  { %1125 = vmatprep.subr.bf16.mxu0 %v1475_v15 }
  0x4a   :  { %1127 = vmatpush1.bf16.msra.mxu0 %v1479_v20 }
  0x4b   :  { %1129 = vmatprep.subr.bf16.mxu0 %v1483_v21 }
  0x4e   :  { %1131 = vmatpush1.bf16.msra.mxu0 %v1487_v26 }
  0x4f   :  { %1133 = vmatprep.subr.bf16.mxu0 %v1491_v27 }
  0x52   :  { %1135 = vmatpush1.bf16.msra.mxu0 %v1495_v32 }
  0x53   :  { %1137 = vmatprep.subr.bf16.mxu0 %v1499_v33 }
  0x56   :  { %1139 = vmatpush1.bf16.msra.mxu0 %v1503_v36 }
  0x57   :  { %1165 = vmatprep.subr.bf16.mxu0 %v1462_v4 }
 0x114   :  { %v167_v48 = vpop.f32.mrb[0].mxu0 }
 0x115   :  { %v168_v49 = vadd.f32 %v167_v48, %v1532_v45  ;;  %v169_v50 = vpop.f32.mrb[1].mxu0 }
 0x116   :  { %v170_v51 = vadd.f32 %v169_v50, %v1534_v46 }
 0x117   :  { %v172_v52 = vmul.f32 0.5, %v168_v49  ;;  %v313_v49 = vld [vmem:[#allocation3 + $0x4] sm:$0x3] }
 0x118   :  { %v173_v53 = vmul.f32 0.5, %v170_v51 }
 0x119   :  { %1293 = vtanh.f32 %v172_v52 }
 0x11a   :  { %v175_v54 = vsel %vm55_vm2, %v170_v51, %v173_v53 }
 0x11b   :  { %1295 = vtanh.f32 %v175_v54 }
 0x123   :  { %v1294_v55 = vpop.eup %1293 }
 0x124   :  { %v178_v57 = vmul.f32 0.5, %v1294_v55 }
 0x125   :  { %v1296_v56 = vpop.eup %1295 }
 0x126   :  { %v179_v58 = vmul.f32 0.5, %v1296_v56  ;;  %v180_v60 = vadd.f32 0.5, %v178_v57 }
 0x128   :  { %v181_v59 = vadd.f32 0.5, %v179_v58  ;;  %v184_v63 = vmul.f32 0.0, %v180_v60 }
 0x12a   :  { %v183_v61 = vsel %vm55_vm2, %v1296_v56, %v181_v59 }
 0x12b   :  { %v185_v62 = vmul.f32 %v183_v61, %v180_v60 }
 0x12d   :  { %187 = vrot.lane.b32.xlu0 %v185_v62, %s1402_s2 }
 0x19f   :  { %v188_v1 = vpop.permute.xlu0 %187 }
 0x1a0   :  { %v190_v2 = vadd.f32 %v188_v1, %v184_v63 }
 0x1a2   :  { %1297 = vtanh.f32 %v190_v2 }
 0x1ac   :  { %v1298_v3 = vpop.eup %1297 }
 0x1ad   :  { %v192_v5 = vmul.f32 %v1298_v3, %v183_v61 }
 0x1af   :  { %197 = vrot.lane.b32.xlu0 %v192_v5, %s1402_s2 }
 0x221   :  { %v198_v6 = vpop.permute.xlu0 %197 }
 0x222   :  { %v200_v7 = vsel %vm194_vm3, %v198_v6, 0.0 }
 0x223   :  { %209 = vrot.lane.b32.xlu1 %v200_v7, %s1396_s28 }
 0x227   :  { %202 = vrot.lane.b32.xlu1 %v190_v2, %s1402_s2 }
 0x295   :  { %v210_v11 = vpop.permute.xlu1 %209 }
 0x296   :  { %v212_v12 = vsel %vm59_vm0, %v207_v10, %v210_v11 }
 0x297   :  { %1059 = vmatmul.mubr.msk.f32.vlgmr.msra.gmra.mrb[0].mxu1 %vm97_vm1, %v212_v12  ;;  %v415_v12 = vld [vmem:[#allocation3 + $0x6] sm:$0x3] }
 0x298   :  { %1143 = vmatpush1.bf16.msra.mxu1 %v1464_v8  ;;  %488 = vmatprep.mubr.f32.mxu1 %v1401_v0 }
 0x299   :  { %v203_v13 = vpop.permute.xlu1 %202  ;;  %1145 = vmatprep.subr.bf16.mxu1 %v1466_v9 }
 0x29a   :  { %v205_v16 = vsel %vm194_vm3, %v203_v13, 0.0 }
 0x29b   :  { %300 = vrot.lane.b32.xlu0 %v205_v16, %s1402_s2 }
 0x29c   :  { %1147 = vmatpush1.bf16.msra.mxu1 %v1471_v14 }
 0x29d   :  { %1149 = vmatprep.subr.bf16.mxu1 %v1475_v15 }
 0x2a0   :  { %1151 = vmatpush1.bf16.msra.mxu1 %v1479_v20 }
 0x2a1   :  { %1153 = vmatprep.subr.bf16.mxu1 %v1483_v21 }
 0x2a4   :  { %1155 = vmatpush1.bf16.msra.mxu1 %v1487_v26 }
 0x2a5   :  { %1157 = vmatprep.subr.bf16.mxu1 %v1491_v27 }
 0x2a8   :  { %1159 = vmatpush1.bf16.msra.mxu1 %v1495_v32 }
 0x2a9   :  { %1161 = vmatprep.subr.bf16.mxu1 %v1499_v33 }
 0x2ac   :  { %1163 = vmatpush1.bf16.msra.mxu1 %v1503_v36 }
 0x2ad   :  { %1189 = vmatprep.subr.bf16.mxu1 %v1462_v4 }
 0x30d   :  { %v301_v39 = vpop.permute.xlu0 %300 }
 0x36a   :  { %v282_v17 = vpop.f32.mrb[0].mxu1 }
 0x36b   :  { %v283_v18 = vadd.f32 %v282_v17, %v1532_v45  ;;  %v284_v19 = vpop.f32.mrb[1].mxu1 }
 0x36c   :  { %v285_v22 = vadd.f32 %v284_v19, %v1534_v46 }
 0x36d   :  { %v287_v23 = vmul.f32 0.5, %v283_v18 }
 0x36e   :  { %v288_v24 = vmul.f32 0.5, %v285_v22 }
 0x36f   :  { %1299 = vtanh.f32 %v287_v23 }
 0x370   :  { %v290_v25 = vsel %vm55_vm2, %v285_v22, %v288_v24 }
 0x371   :  { %1301 = vtanh.f32 %v290_v25 }
 0x379   :  { %v1300_v28 = vpop.eup %1299 }
 0x37a   :  { %v293_v30 = vmul.f32 0.5, %v1300_v28 }
 0x37b   :  { %v1302_v29 = vpop.eup %1301 }
 0x37c   :  { %v294_v31 = vmul.f32 0.5, %v1302_v29  ;;  %v295_v35 = vadd.f32 0.5, %v293_v30 }
 0x37e   :  { %v296_v34 = vadd.f32 0.5, %v294_v31  ;;  %v303_v40 = vmul.f32 %v301_v39, %v295_v35 }
 0x380   :  { %v298_v37 = vsel %vm55_vm2, %v1302_v29, %v296_v34 }
 0x381   :  { %v304_v38 = vmul.f32 %v298_v37, %v295_v35 }
 0x383   :  { %306 = vrot.lane.b32.xlu1 %v304_v38, %s1402_s2 }
 0x3f5   :  { %v307_v41 = vpop.permute.xlu1 %306 }
 0x3f6   :  { %v309_v42 = vadd.f32 %v307_v41, %v303_v40 }
 0x3f8   :  { %1303 = vtanh.f32 %v309_v42 }
 0x402   :  { %v1304_v43 = vpop.eup %1303 }
 0x403   :  { %v311_v48 = vmul.f32 %v1304_v43, %v298_v37 }
 0x405   :  { %315 = vrot.lane.b32.xlu0 %v311_v48, %s1403_s21  ;;  %v517_v48 = vld [vmem:[#allocation3 + $0x8] sm:$0x3] }
 0x477   :  { %v316_v50 = vpop.permute.xlu0 %315 }
 0x478   :  { %v318_v51 = vsel %vm59_vm0, %v313_v49, %v316_v50 }
 0x479   :  { %1060 = vmatmul.mubr.msk.f32.vlgmr.msra.gmra.mrb[2].mxu0 %vm97_vm1, %v318_v51 }
 0x47a   :  { %1167 = vmatpush1.bf16.msra.mxu0 %v1464_v8  ;;  %590 = vmatprep.mubr.f32.mxu0 %v1401_v0 }
 0x47b   :  { %1169 = vmatprep.subr.bf16.mxu0 %v1466_v9 }
 0x47e   :  { %1171 = vmatpush1.bf16.msra.mxu0 %v1471_v14 }
 0x47f   :  { %1173 = vmatprep.subr.bf16.mxu0 %v1475_v15 }
 0x482   :  { %1175 = vmatpush1.bf16.msra.mxu0 %v1479_v20 }
 0x483   :  { %1177 = vmatprep.subr.bf16.mxu0 %v1483_v21 }
 0x486   :  { %1179 = vmatpush1.bf16.msra.mxu0 %v1487_v26 }
 0x487   :  { %1181 = vmatprep.subr.bf16.mxu0 %v1491_v27 }
 0x48a   :  { %1183 = vmatpush1.bf16.msra.mxu0 %v1495_v32 }
 0x48b   :  { %1185 = vmatprep.subr.bf16.mxu0 %v1499_v33 }
 0x48e   :  { %1187 = vmatpush1.bf16.msra.mxu0 %v1503_v36 }
 0x48f   :  { %1213 = vmatprep.subr.bf16.mxu0 %v1462_v4 }
 0x54c   :  { %v388_v52 = vpop.f32.mrb[2].mxu0 }
 0x54d   :  { %v389_v53 = vadd.f32 %v388_v52, %v1532_v45  ;;  %v390_v54 = vpop.f32.mrb[3].mxu0 }
 0x54e   :  { %v391_v55 = vadd.f32 %v390_v54, %v1534_v46 }
 0x54f   :  { %v393_v56 = vmul.f32 0.5, %v389_v53 }
 0x550   :  { %v394_v57 = vmul.f32 0.5, %v391_v55 }
 0x551   :  { %1305 = vtanh.f32 %v393_v56 }
 0x552   :  { %v396_v58 = vsel %vm55_vm2, %v391_v55, %v394_v57 }
 0x553   :  { %1307 = vtanh.f32 %v396_v58 }
 0x55b   :  { %v1306_v59 = vpop.eup %1305 }
 0x55c   :  { %v399_v61 = vmul.f32 0.5, %v1306_v59 }
 0x55d   :  { %v1308_v60 = vpop.eup %1307 }
 0x55e   :  { %v400_v62 = vmul.f32 0.5, %v1308_v60  ;;  %v401_v1 = vadd.f32 0.5, %v399_v61 }
 0x560   :  { %v402_v63 = vadd.f32 0.5, %v400_v62  ;;  %v405_v5 = vmul.f32 %v401_v1, %v309_v42 }
 0x562   :  { %v404_v2 = vsel %vm55_vm2, %v1308_v60, %v402_v63 }
 0x563   :  { %v406_v3 = vmul.f32 %v404_v2, %v401_v1 }
 0x565   :  { %408 = vrot.lane.b32.xlu1 %v406_v3, %s1402_s2 }
 0x5d7   :  { %v409_v6 = vpop.permute.xlu1 %408 }
 0x5d8   :  { %v411_v7 = vadd.f32 %v409_v6, %v405_v5 }
 0x5da   :  { %1309 = vtanh.f32 %v411_v7 }
 0x5e4   :  { %v1310_v10 = vpop.eup %1309 }
 0x5e5   :  { %v413_v11 = vmul.f32 %v1310_v10, %v404_v2  ;;  %v619_v10 = vld [vmem:[#allocation3 + $0xa] sm:$0x3] }
 0x5e7   :  { %417 = vrot.lane.b32.xlu0 %v413_v11, %s1403_s21 }
 0x659   :  { %v418_v13 = vpop.permute.xlu0 %417 }
 0x65a   :  { %v420_v16 = vsel %vm59_vm0, %v415_v12, %v418_v13 }
 0x65b   :  { %1061 = vmatmul.mubr.msk.f32.vlgmr.msra.gmra.mrb[2].mxu1 %vm97_vm1, %v420_v16 }
 0x65c   :  { %1191 = vmatpush1.bf16.msra.mxu1 %v1464_v8  ;;  %692 = vmatprep.mubr.f32.mxu1 %v1401_v0 }
 0x65d   :  { %1193 = vmatprep.subr.bf16.mxu1 %v1466_v9 }
 0x660   :  { %1195 = vmatpush1.bf16.msra.mxu1 %v1471_v14 }
 0x661   :  { %1197 = vmatprep.subr.bf16.mxu1 %v1475_v15 }
 0x664   :  { %1199 = vmatpush1.bf16.msra.mxu1 %v1479_v20 }
 0x665   :  { %1201 = vmatprep.subr.bf16.mxu1 %v1483_v21 }
 0x668   :  { %1203 = vmatpush1.bf16.msra.mxu1 %v1487_v26 }
 0x669   :  { %1205 = vmatprep.subr.bf16.mxu1 %v1491_v27 }
 0x66c   :  { %1207 = vmatpush1.bf16.msra.mxu1 %v1495_v32 }
 0x66d   :  { %1209 = vmatprep.subr.bf16.mxu1 %v1499_v33 }
 0x670   :  { %1211 = vmatpush1.bf16.msra.mxu1 %v1503_v36 }
 0x671   :  { %1237 = vmatprep.subr.bf16.mxu1 %v1462_v4 }
 0x72e   :  { %v490_v17 = vpop.f32.mrb[2].mxu1 }
 0x72f   :  { %v491_v18 = vadd.f32 %v490_v17, %v1532_v45  ;;  %v492_v19 = vpop.f32.mrb[3].mxu1 }
 0x730   :  { %v493_v22 = vadd.f32 %v492_v19, %v1534_v46 }
 0x731   :  { %v495_v23 = vmul.f32 0.5, %v491_v18 }
 0x732   :  { %v496_v24 = vmul.f32 0.5, %v493_v22 }
 0x733   :  { %1311 = vtanh.f32 %v495_v23 }
 0x734   :  { %v498_v25 = vsel %vm55_vm2, %v493_v22, %v496_v24 }
 0x735   :  { %1313 = vtanh.f32 %v498_v25 }
 0x73d   :  { %v1312_v28 = vpop.eup %1311 }
 0x73e   :  { %v501_v30 = vmul.f32 0.5, %v1312_v28 }
 0x73f   :  { %v1314_v29 = vpop.eup %1313 }
 0x740   :  { %v502_v31 = vmul.f32 0.5, %v1314_v29  ;;  %v503_v35 = vadd.f32 0.5, %v501_v30 }
 0x742   :  { %v504_v34 = vadd.f32 0.5, %v502_v31  ;;  %v507_v39 = vmul.f32 %v503_v35, %v411_v7 }
 0x744   :  { %v506_v37 = vsel %vm55_vm2, %v1314_v29, %v504_v34 }
 0x745   :  { %v508_v38 = vmul.f32 %v506_v37, %v503_v35 }
 0x747   :  { %510 = vrot.lane.b32.xlu1 %v508_v38, %s1402_s2 }
 0x7b9   :  { %v511_v40 = vpop.permute.xlu1 %510 }
 0x7ba   :  { %v513_v41 = vadd.f32 %v511_v40, %v507_v39 }
 0x7bc   :  { %1315 = vtanh.f32 %v513_v41 }
 0x7c6   :  { %v1316_v42 = vpop.eup %1315 }
 0x7c7   :  { %v515_v43 = vmul.f32 %v1316_v42, %v506_v37  ;;  %v721_v42 = vld [vmem:[#allocation3 + $0xc] sm:$0x3] }
 0x7c9   :  { %519 = vrot.lane.b32.xlu0 %v515_v43, %s1403_s21 }
 0x83b   :  { %v520_v49 = vpop.permute.xlu0 %519 }
 0x83c   :  { %v522_v50 = vsel %vm59_vm0, %v517_v48, %v520_v49 }
 0x83d   :  { %1062 = vmatmul.mubr.msk.f32.vlgmr.msra.gmra.mrb[4].mxu0 %vm97_vm1, %v522_v50 }
 0x83e   :  { %1215 = vmatpush1.bf16.msra.mxu0 %v1464_v8  ;;  %794 = vmatprep.mubr.f32.mxu0 %v1401_v0 }
 0x83f   :  { %1217 = vmatprep.subr.bf16.mxu0 %v1466_v9 }
 0x842   :  { %1219 = vmatpush1.bf16.msra.mxu0 %v1471_v14 }
 0x843   :  { %1221 = vmatprep.subr.bf16.mxu0 %v1475_v15 }
 0x846   :  { %1223 = vmatpush1.bf16.msra.mxu0 %v1479_v20 }
 0x847   :  { %1225 = vmatprep.subr.bf16.mxu0 %v1483_v21 }
 0x84a   :  { %1227 = vmatpush1.bf16.msra.mxu0 %v1487_v26 }
 0x84b   :  { %1229 = vmatprep.subr.bf16.mxu0 %v1491_v27 }
 0x84e   :  { %1231 = vmatpush1.bf16.msra.mxu0 %v1495_v32 }
 0x84f   :  { %1233 = vmatprep.subr.bf16.mxu0 %v1499_v33 }
 0x852   :  { %1235 = vmatpush1.bf16.msra.mxu0 %v1503_v36 }
 0x853   :  { %1261 = vmatprep.subr.bf16.mxu0 %v1462_v4 }
 0x910   :  { %v592_v51 = vpop.f32.mrb[4].mxu0 }
 0x911   :  { %v593_v52 = vadd.f32 %v592_v51, %v1532_v45  ;;  %v594_v53 = vpop.f32.mrb[5].mxu0 }
 0x912   :  { %v595_v54 = vadd.f32 %v594_v53, %v1534_v46 }
 0x913   :  { %v597_v55 = vmul.f32 0.5, %v593_v52 }
 0x914   :  { %v598_v56 = vmul.f32 0.5, %v595_v54 }
 0x915   :  { %1317 = vtanh.f32 %v597_v55 }
 0x916   :  { %v600_v57 = vsel %vm55_vm2, %v595_v54, %v598_v56 }
 0x917   :  { %1319 = vtanh.f32 %v600_v57  ;;  %v823_v57 = vld [vmem:[#allocation3 + $0xe] sm:$0x3] }
 0x91f   :  { %v1318_v58 = vpop.eup %1317 }
 0x920   :  { %v603_v60 = vmul.f32 0.5, %v1318_v58 }
 0x921   :  { %v1320_v59 = vpop.eup %1319 }
 0x922   :  { %v604_v61 = vmul.f32 0.5, %v1320_v59  ;;  %v605_v63 = vadd.f32 0.5, %v603_v60 }
 0x924   :  { %v606_v62 = vadd.f32 0.5, %v604_v61  ;;  %v609_v2 = vmul.f32 %v605_v63, %v513_v41 }
 0x926   :  { %v608_v4 = vsel %vm55_vm2, %v1320_v59, %v606_v62 }
 0x927   :  { %v610_v1 = vmul.f32 %v608_v4, %v605_v63 }
 0x929   :  { %612 = vrot.lane.b32.xlu1 %v610_v1, %s1402_s2 }
 0x99b   :  { %v613_v3 = vpop.permute.xlu1 %612 }
 0x99c   :  { %v615_v5 = vadd.f32 %v613_v3, %v609_v2 }
 0x99e   :  { %1321 = vtanh.f32 %v615_v5 }
 0x9a8   :  { %v1322_v6 = vpop.eup %1321 }
 0x9a9   :  { %v617_v7 = vmul.f32 %v1322_v6, %v608_v4 }
 0x9ab   :  { %621 = vrot.lane.b32.xlu0 %v617_v7, %s1403_s21 }
 0xa1d   :  { %v622_v11 = vpop.permute.xlu0 %621 }
 0xa1e   :  { %v624_v12 = vsel %vm59_vm0, %v619_v10, %v622_v11 }
 0xa1f   :  { %1063 = vmatmul.mubr.msk.f32.vlgmr.msra.gmra.mrb[4].mxu1 %vm97_vm1, %v624_v12 }
 0xa20   :  { %1239 = vmatpush1.bf16.msra.mxu1 %v1464_v8  ;;  %896 = vmatprep.mubr.f32.mxu1 %v1401_v0 }
 0xa21   :  { %1241 = vmatprep.subr.bf16.mxu1 %v1466_v9 }
 0xa24   :  { %1243 = vmatpush1.bf16.msra.mxu1 %v1471_v14 }
 0xa25   :  { %1245 = vmatprep.subr.bf16.mxu1 %v1475_v15 }
 0xa28   :  { %1247 = vmatpush1.bf16.msra.mxu1 %v1479_v20 }
 0xa29   :  { %1249 = vmatprep.subr.bf16.mxu1 %v1483_v21 }
 0xa2c   :  { %1251 = vmatpush1.bf16.msra.mxu1 %v1487_v26 }
 0xa2d   :  { %1253 = vmatprep.subr.bf16.mxu1 %v1491_v27 }
 0xa30   :  { %1255 = vmatpush1.bf16.msra.mxu1 %v1495_v32 }
 0xa31   :  { %1257 = vmatprep.subr.bf16.mxu1 %v1499_v33 }
 0xa34   :  { %1259 = vmatpush1.bf16.msra.mxu1 %v1503_v36 }
 0xaf2   :  { %v694_v13 = vpop.f32.mrb[4].mxu1 }
 0xaf3   :  { %v695_v16 = vadd.f32 %v694_v13, %v1532_v45  ;;  %v696_v17 = vpop.f32.mrb[5].mxu1 }
 0xaf4   :  { %v697_v18 = vadd.f32 %v696_v17, %v1534_v46 }
 0xaf5   :  { %v699_v19 = vmul.f32 0.5, %v695_v16 }
 0xaf6   :  { %v700_v22 = vmul.f32 0.5, %v697_v18 }
 0xaf7   :  { %1323 = vtanh.f32 %v699_v19 }
 0xaf8   :  { %v702_v23 = vsel %vm55_vm2, %v697_v18, %v700_v22 }
 0xaf9   :  { %1325 = vtanh.f32 %v702_v23 }
 0xb01   :  { %v1324_v24 = vpop.eup %1323 }
 0xb02   :  { %v705_v28 = vmul.f32 0.5, %v1324_v24 }
 0xb03   :  { %v1326_v25 = vpop.eup %1325 }
 0xb04   :  { %v706_v29 = vmul.f32 0.5, %v1326_v25  ;;  %v707_v31 = vadd.f32 0.5, %v705_v28 }
 0xb06   :  { %v708_v30 = vadd.f32 0.5, %v706_v29  ;;  %v711_v37 = vmul.f32 %v707_v31, %v615_v5 }
 0xb08   :  { %v710_v34 = vsel %vm55_vm2, %v1326_v25, %v708_v30 }
 0xb09   :  { %v712_v35 = vmul.f32 %v710_v34, %v707_v31 }
 0xb0b   :  { %714 = vrot.lane.b32.xlu1 %v712_v35, %s1402_s2 }
 0xb7d   :  { %v715_v38 = vpop.permute.xlu1 %714 }
 0xb7e   :  { %v717_v39 = vadd.f32 %v715_v38, %v711_v37 }
 0xb80   :  { %1327 = vtanh.f32 %v717_v39 }
 0xb8a   :  { %v1328_v40 = vpop.eup %1327 }
 0xb8b   :  { %v719_v41 = vmul.f32 %v1328_v40, %v710_v34 }
 0xb8d   :  { %723 = vrot.lane.b32.xlu0 %v719_v41, %s1403_s21 }
 0xbff   :  { %v724_v43 = vpop.permute.xlu0 %723 }
 0xc00   :  { %v726_v48 = vsel %vm59_vm0, %v721_v42, %v724_v43 }
 0xc01   :  { %1064 = vmatmul.mubr.msk.f32.vlgmr.msra.gmra.mrb[6].mxu0 %vm97_vm1, %v726_v48 }
 0xc02   :  { %1263 = vmatpush1.bf16.msra.mxu0 %v1464_v8  ;;  %996 = vmatprep.mubr.f32.mxu0 %v1401_v0 }
 0xc03   :  { %1265 = vmatprep.subr.bf16.mxu0 %v1466_v9 }
 0xc06   :  { %1267 = vmatpush1.bf16.msra.mxu0 %v1471_v14 }
 0xc07   :  { %1269 = vmatprep.subr.bf16.mxu0 %v1475_v15 }
 0xc0a   :  { %1271 = vmatpush1.bf16.msra.mxu0 %v1479_v20 }
 0xc0b   :  { %1273 = vmatprep.subr.bf16.mxu0 %v1483_v21 }
 0xc0e   :  { %1275 = vmatpush1.bf16.msra.mxu0 %v1487_v26 }
 0xc0f   :  { %1277 = vmatprep.subr.bf16.mxu0 %v1491_v27 }
 0xc12   :  { %1279 = vmatpush1.bf16.msra.mxu0 %v1495_v32 }
 0xc13   :  { %1281 = vmatprep.subr.bf16.mxu0 %v1499_v33 }
 0xc16   :  { %1283 = vmatpush1.bf16.msra.mxu0 %v1503_v36 }
 0xcd4   :  { %v796_v0 = vpop.f32.mrb[6].mxu0 }
 0xcd5   :  { %v797_v8 = vadd.f32 %v796_v0, %v1532_v45  ;;  %v798_v9 = vpop.f32.mrb[7].mxu0 }
 0xcd6   :  { %v799_v14 = vadd.f32 %v798_v9, %v1534_v46 }
 0xcd7   :  { %v801_v15 = vmul.f32 0.5, %v797_v8 }
 0xcd8   :  { %v802_v20 = vmul.f32 0.5, %v799_v14 }
 0xcd9   :  { %1329 = vtanh.f32 %v801_v15 }
 0xcda   :  { %v804_v21 = vsel %vm55_vm2, %v799_v14, %v802_v20 }
 0xcdb   :  { %1331 = vtanh.f32 %v804_v21 }
 0xce3   :  { %v1330_v26 = vpop.eup %1329 }
 0xce4   :  { %v807_v32 = vmul.f32 0.5, %v1330_v26 }
 0xce5   :  { %v1332_v27 = vpop.eup %1331 }
 0xce6   :  { %v808_v49 = vmul.f32 0.5, %v1332_v27  ;;  %v809_v50 = vadd.f32 0.5, %v807_v32 }
 0xce8   :  { %v810_v33 = vadd.f32 0.5, %v808_v49  ;;  %v813_v52 = vmul.f32 %v809_v50, %v717_v39 }
 0xcea   :  { %v812_v36 = vsel %vm55_vm2, %v1332_v27, %v810_v33  ;;  %v1048_v27 = vstv %s1724_s4 }
 0xceb   :  { %v814_v51 = vmul.f32 %v812_v36, %v809_v50 }
 0xced   :  { %816 = vrot.lane.b32.xlu1 %v814_v51, %s1402_s2 }
 0xd5f   :  { %v817_v53 = vpop.permute.xlu1 %816 }
 0xd60   :  { %v819_v54 = vadd.f32 %v817_v53, %v813_v52 }
 0xd62   :  { %1333 = vtanh.f32 %v819_v54 }
 0xd6c   :  { %v1334_v55 = vpop.eup %1333 }
 0xd6d   :  { %v821_v56 = vmul.f32 %v1334_v55, %v812_v36 }
 0xd6f   :  { %825 = vrot.lane.b32.xlu0 %v821_v56, %s1403_s21 }
 0xde1   :  { %v826_v58 = vpop.permute.xlu0 %825 }
 0xde2   :  { %v828_v59 = vsel %vm59_vm0, %v823_v57, %v826_v58 }
 0xde3   :  { %1065 = vmatmul.mubr.msk.f32.vlgmr.msra.gmra.mrb[6].mxu1 %vm97_vm1, %v828_v59 }
 0xeb6   :  { %v898_v60 = vpop.f32.mrb[6].mxu1 }
 0xeb7   :  { %v899_v61 = vadd.f32 %v898_v60, %v1532_v45  ;;  %v900_v62 = vpop.f32.mrb[7].mxu1 }
 0xeb8   :  { %v901_v63 = vadd.f32 %v900_v62, %v1534_v46 }
 0xeb9   :  { %v903_v4 = vmul.f32 0.5, %v899_v61 }
 0xeba   :  { %v904_v1 = vmul.f32 0.5, %v901_v63 }
 0xebb   :  { %1335 = vtanh.f32 %v903_v4 }
 0xebc   :  { %v906_v2 = vsel %vm55_vm2, %v901_v63, %v904_v1 }
 0xebd   :  { %1337 = vtanh.f32 %v906_v2 }
 0xec5   :  { %v1336_v3 = vpop.eup %1335 }
 0xec6   :  { %v909_v6 = vmul.f32 0.5, %v1336_v3 }
 0xec7   :  { %v1338_v5 = vpop.eup %1337 }
 0xec8   :  { %v910_v7 = vmul.f32 0.5, %v1338_v5  ;;  %v911_v11 = vadd.f32 0.5, %v909_v6 }
 0xeca   :  { %v912_v10 = vadd.f32 0.5, %v910_v7  ;;  %v915_v16 = vmul.f32 %v911_v11, %v819_v54 }
 0xecc   :  { %v914_v12 = vsel %vm55_vm2, %v1338_v5, %v912_v10 }
 0xecd   :  { %v916_v13 = vmul.f32 %v914_v12, %v911_v11 }
 0xecf   :  { %918 = vrot.lane.b32.xlu1 %v916_v13, %s1402_s2 }
 0xf41   :  { %v919_v17 = vpop.permute.xlu1 %918 }
 0xf42   :  { %v921_v18 = vadd.f32 %v919_v17, %v915_v16 }
 0xf44   :  { %1339 = vtanh.f32 %v921_v18 }
 0xf4e   :  { %v1340_v19 = vpop.eup %1339 }
 0xf4f   :  { %v923_v22 = vmul.f32 %v1340_v19, %v914_v12 }
 0xf51   :  { %925 = vrot.lane.b32.xlu0 %v923_v22, %s1403_s21 }
 0xfc3   :  { %v926_v23 = vpop.permute.xlu0 %925 }
 0xfc4   :  { %v928_v24 = vsel %vm59_vm0, 0.0, %v926_v23 }
 0xfc5   :  { %1066 = vmatmul.mubr.msk.f32.vlgmr.msra.gmra.mrb[8].mxu0 %vm97_vm1, %v928_v24 }
0x1098   :  { %v998_v25 = vpop.f32.mrb[8].mxu0 }
0x1099   :  { %v999_v28 = vadd.f32 %v998_v25, %v1532_v45  ;;  %v1000_v29 = vpop.f32.mrb[9].mxu0 }
0x109a   :  { %v1001_v30 = vadd.f32 %v1000_v29, %v1534_v46 }
0x109b   :  { %v1003_v31 = vmul.f32 0.5, %v999_v28 }
0x109c   :  { %v1004_v34 = vmul.f32 0.5, %v1001_v30 }
0x109d   :  { %1341 = vtanh.f32 %v1003_v31 }
0x109e   :  { %v1006_v35 = vsel %vm55_vm2, %v1001_v30, %v1004_v34 }
0x109f   :  { %1343 = vtanh.f32 %v1006_v35 }
0x10a7   :  { %v1342_v37 = vpop.eup %1341 }
0x10a8   :  { %v1009_v39 = vmul.f32 0.5, %v1342_v37 }
0x10a9   :  { %v1344_v38 = vpop.eup %1343 }
0x10aa   :  { %v1010_v40 = vmul.f32 0.5, %v1344_v38  ;;  %v1011_v42 = vadd.f32 0.5, %v1009_v39 }
0x10ac   :  { %v1012_v41 = vadd.f32 0.5, %v1010_v40  ;;  %v1015_v46 = vmul.f32 %v1011_v42, %v921_v18 }
0x10ae   :  { %v1014_v43 = vsel %vm55_vm2, %v1344_v38, %v1012_v41 }
0x10af   :  { %v1016_v45 = vmul.f32 %v1014_v43, %v1011_v42 }
0x10b1   :  { %1018 = vrot.lane.b32.xlu1 %v1016_v45, %s1402_s2 }
0x10b5   :  { %1031 = vrot.lane.b32.xlu1 %v923_v22, %s1402_s2 }
0x1123   :  { %v1019_v48 = vpop.permute.xlu1 %1018 }
0x1124   :  { %v1021_v0 = vadd.f32 %v1019_v48, %v1015_v46 }
0x1126   :  { %1345 = vtanh.f32 %v1021_v0 }
0x1127   :  { %v1032_v14 = vpop.permute.xlu1 %1031 }
0x1130   :  { %v1346_v8 = vpop.eup %1345 }
0x1131   :  { %v1023_v9 = vmul.f32 %v1346_v8, %v1014_v43 }
0x1133   :  { %1028 = vrot.lane.b32.xlu0 %v1023_v9, %s1402_s2 }
0x11a5   :  { %v1029_v15 = vpop.permute.xlu0 %1028 }
0x11a6   :  { %v1034_v20 = vsel %vm1026_vm6, %v1029_v15, %v1032_v14 }
0x11a7   :  { %v1042_v21 = vmul.f32 %v1067_v47, %v1034_v20 }
0x11a9   :  { %v1044_v26 = vsel %vm1043_vm7, %v1042_v21, 0.0 }
0x11aa   :  { %1045 = vadd.xlane.f32.xlu0 %v1044_v26 }
0x1237   :  { %v1046_v32 = vpop.xlane.xlu0 %1045 }
0x1238   :  { %v1049_v49 = vadd.f32 %v1048_v27, %v1046_v32 }
0x123a   :  { %1051 = vst.msk [vmem:[%s1725_s5] sm:$0x3] %vm1050_vm8, %v1049_v49 }
0x123b   :  { %1056 = vsyncpa [#allocation4], 1 }
0x123c   :  { %1057 = vsyncpa [#allocation6], 1 }

</bundles_post_ra>
